<compile_context>
chip_gen: v7x
topology: tpu7x:2x2x1
jax: 0.10.0
libtpu: 0.0.40
codegen_flags: <defaults>
</compile_context>

<pallas_src>
import functools

import jax
import jax.numpy as jnp
from jax.experimental import pallas as pl
from jax.experimental.pallas import tpu as pltpu

_LANE = 128                      # lanes per vreg (fast axis)
_BLOCK_BYTES = 2 * 1024 * 1024   # HBM bytes per input block per grid step
_FALLBACK_ELEMS = 1 << 16        # below this, skip the kernel (launch overhead)


def _round_up(x, m):
    return (x + m - 1) // m * m


def _rmse_partial_kernel(o_ref, l_ref, out_ref, *,
                         rows_total, tile_rows, steps_per_core, needs_mask):
    """Per-core (8,128) vreg accumulator of sum((o - l)^2) over its row range."""
    c = pl.program_id(0)   # core / row-range index   ("parallel")
    i = pl.program_id(1)   # step within core's range ("arbitrary" reduction)

    @pl.when(i == 0)
    def _():
        out_ref[...] = jnp.zeros_like(out_ref)

    err = o_ref[...].astype(jnp.float32) - l_ref[...].astype(jnp.float32)
    sq = err * err

    def _accumulate(vals):
        # (tile_rows, 128) -> (8, 128): vreg-wise VALU adds only, no XLU reduce.
        out_ref[...] += jnp.sum(vals.reshape(-1, 8, _LANE), axis=0)

    if needs_mask:
        b = c * steps_per_core + i                       # logical block index
        is_tail = (b + 1) * tile_rows > rows_total       # block extends past end

        @pl.when(is_tail)
        def _():
            row_ids = b * tile_rows + jax.lax.broadcasted_iota(
                jnp.int32, (tile_rows, _LANE), 0)
            _accumulate(jnp.where(row_ids < rows_total, sq, 0.0))

        @pl.when(jnp.logical_not(is_tail))
        def _():
            _accumulate(sq)
    else:
        _accumulate(sq)


def loss_rmse(outputs, label, *, block_rows=None, min_kernel_elems=_FALLBACK_ELEMS):
    """RMSE loss matching torch: sqrt(mean((outputs - label)**2))."""
    assert outputs.shape == label.shape, "outputs and label must have same shape"
    n = outputs.size

    if n < min_kernel_elems:
        # Small inputs: let XLA fuse the elementwise + reduce directly.
        err = outputs.astype(jnp.float32) - label.astype(jnp.float32)
        return jnp.sqrt(jnp.sum(err * err) / n)

    itemsize = max(jnp.dtype(outputs.dtype).itemsize,
                   jnp.dtype(label.dtype).itemsize)
    sublane = 8 * max(1, 4 // itemsize)   # rows per packed vreg for this dtype

    if block_rows is None:
        block_rows = max(32, (_BLOCK_BYTES // (_LANE * itemsize)) // 32 * 32)
    assert block_rows % 32 == 0, "block_rows must be a multiple of 32"

    o_flat = outputs.reshape(-1)
    l_flat = label.reshape(-1)

    # Pad to a full 128-lane row.  Large inputs with numel % 128 == 0 never copy.
    padded = _round_up(n, _LANE)
    rows = padded // _LANE
    if rows <= block_rows:
        # Single-block case: round rows to a packed-vreg boundary so the one
        # block is sublane-aligned (tiny array, copy is negligible).
        rows = _round_up(rows, sublane)
        padded = rows * _LANE
    if padded != n:
        # TODO(synk): remainder path pads (copies) both tensors; only hit when
        # numel % 128 != 0 or the whole array fits in one block.  Zero padding
        # contributes 0 to the sum and we still divide by the true n.
        o_flat = jnp.pad(o_flat, (0, padded - n))
        l_flat = jnp.pad(l_flat, (0, padded - n))

    o2 = o_flat.reshape(rows, _LANE)   # no-copy reshape (contiguous)
    l2 = l_flat.reshape(rows, _LANE)

    tile = rows if rows <= block_rows else block_rows
    total_blocks = pl.cdiv(rows, tile)
    num_cores = 2 if total_blocks >= 2 else 1   # v7x: 2 TCs; harmless elsewhere
    steps = pl.cdiv(total_blocks, num_cores)
    needs_mask = (num_cores * steps * tile) != rows
    last_block = total_blocks - 1

    if num_cores * steps > total_blocks:
        # Odd block count: the surplus step of the last core re-reads the final
        # block (clamped index); the kernel masks all of its rows to zero.
        def in_map(c, i):
            return (jnp.minimum(c * steps + i, last_block), 0)
    else:
        def in_map(c, i):
            return (c * steps + i, 0)

    cost = pl.CostEstimate(
        flops=3 * n,                       # sub, mul, add per element
        transcendentals=0,                 # sqrt happens in the wrapper
        bytes_accessed=n * (jnp.dtype(outputs.dtype).itemsize
                            + jnp.dtype(label.dtype).itemsize)
                       + num_cores * 8 * _LANE * 4,
    )

    partials = pl.pallas_call(
        functools.partial(_rmse_partial_kernel, rows_total=rows, tile_rows=tile,
                          steps_per_core=steps, needs_mask=needs_mask),
        out_shape=jax.ShapeDtypeStruct((num_cores * 8, _LANE), jnp.float32),
        grid_spec=pltpu.PrefetchScalarGridSpec(
            num_scalar_prefetch=0,
            grid=(num_cores, steps),
            in_specs=[
                pl.BlockSpec((tile, _LANE), in_map),
                pl.BlockSpec((tile, _LANE), in_map),
            ],
            out_specs=pl.BlockSpec((8, _LANE), lambda c, i: (c, 0)),
        ),
        compiler_params=pltpu.CompilerParams(
            dimension_semantics=("parallel", "arbitrary"),
            vmem_limit_bytes=32 * 1024 * 1024,
        ),
        cost_estimate=cost,
    )(o2, l2)

    return jnp.sqrt(jnp.sum(partials) / n)


if __name__ == "__main__":
    key = jax.random.PRNGKey(0)
    k1, k2, k3, k4, k5, k6 = jax.random.split(key, 6)

    # 1) Small NCHW shape, kernel path forced: single block, no mask.
    shape = (2, 4, 16, 16)
    o = jax.random.normal(k1, shape, dtype=jnp.float32)
    l = jax.random.normal(k2, shape, dtype=jnp.float32)
    rmse = jax.block_until_ready(loss_rmse(o, l, min_kernel_elems=0))
    ref = jnp.sqrt(jnp.mean((o - l) ** 2))
    assert jnp.allclose(rmse, ref, rtol=1e-5, atol=1e-6), (rmse, ref)

    # 2) grid > 1, two-core split, clamped surplus block and partial tail mask:
    #    19200 elems -> 150 rows of 128 lanes, 32-row blocks -> 5 blocks.
    shape2 = (2, 3, 50, 64)
    o2 = jax.random.normal(k3, shape2, dtype=jnp.float32)
    l2 = jax.random.normal(k4, shape2, dtype=jnp.float32)
    rmse2 = jax.block_until_ready(
        loss_rmse(o2, l2, block_rows=32, min_kernel_elems=0))
    ref2 = jnp.sqrt(jnp.mean((o2 - l2) ** 2))
    assert jnp.allclose(rmse2, ref2, rtol=1e-5, atol=1e-6), (rmse2, ref2)

    # 3) Lane-remainder (numel % 128 != 0) padding path, kernel forced.
    shape3 = (2, 4, 15, 15)
    o3 = jax.random.normal(k5, shape3, dtype=jnp.float32)
    l3 = jax.random.normal(k6, shape3, dtype=jnp.float32)
    rmse3 = jax.block_until_ready(loss_rmse(o3, l3, min_kernel_elems=0))
    ref3 = jnp.sqrt(jnp.mean((o3 - l3) ** 2))
    assert jnp.allclose(rmse3, ref3, rtol=1e-5, atol=1e-6), (rmse3, ref3)

    # 4) Default small-input fallback (pure XLA path).
    rmse4 = jax.block_until_ready(loss_rmse(o, l))
    assert jnp.allclose(rmse4, ref, rtol=1e-5, atol=1e-6), (rmse4, ref)

    print("KERNEL_OK")
</pallas_src>

<mosaic_0001>
module attributes {stable_mosaic.version = 11 : i64} {
  func.func @_rmse_partial_kernel(%arg0: i32, %arg1: i32, %arg2: memref<16x128xf32, #tpu.memory_space<vmem>>, %arg3: memref<16x128xf32, #tpu.memory_space<vmem>>, %arg4: memref<8x128xf32, #tpu.memory_space<vmem>>) attributes {dimension_semantics = [#tpu.dimension_semantics<parallel>, #tpu.dimension_semantics<arbitrary>], iteration_bounds = array<i64: 1, 1>, scalar_prefetch = 0 : i64, scratch_operands = 0 : i64, tpu.core_type = #tpu.core_type<tc>, window_params = [{transform_indices = @transform_0, window_bounds = array<i64: 16, 128>}, {transform_indices = @transform_1, window_bounds = array<i64: 16, 128>}, {transform_indices = @transform_2, window_bounds = array<i64: 8, 128>}]} {
    %c0_i32 = arith.constant 0 : i32
    %0 = arith.cmpi eq, %arg1, %c0_i32 : i32
    %1 = arith.extui %0 : i1 to i32
    %c0_i32_0 = arith.constant 0 : i32
    %2 = arith.cmpi ne, %1, %c0_i32_0 : i32
    scf.if %2 {
      %cst_8 = arith.constant 0.000000e+00 : f32
      %12 = vector.broadcast %cst_8 : f32 to vector<8x128xf32>
      %c0_9 = arith.constant 0 : index
      %c0_10 = arith.constant 0 : index
      %13 = vector.load %arg4[%c0_9, %c0_10] : memref<8x128xf32, #tpu.memory_space<vmem>>, vector<8x128xf32>
      tpu.vector_store %arg4[%c0_9, %c0_10], %12 {strides = array<i32>} : memref<8x128xf32, #tpu.memory_space<vmem>>, vector<8x128xf32>,
    } else {
    }
    %c0 = arith.constant 0 : index
    %c0_1 = arith.constant 0 : index
    %3 = vector.load %arg2[%c0, %c0_1] : memref<16x128xf32, #tpu.memory_space<vmem>>, vector<16x128xf32>
    %c0_2 = arith.constant 0 : index
    %c0_3 = arith.constant 0 : index
    %4 = vector.load %arg3[%c0_2, %c0_3] : memref<16x128xf32, #tpu.memory_space<vmem>>, vector<16x128xf32>
    %5 = arith.subf %3, %4 : vector<16x128xf32>
    %6 = arith.mulf %5, %5 : vector<16x128xf32>
    %c0_4 = arith.constant 0 : index
    %c0_5 = arith.constant 0 : index
    %7 = vector.load %arg4[%c0_4, %c0_5] : memref<8x128xf32, #tpu.memory_space<vmem>>, vector<8x128xf32>
    %8 = vector.shape_cast %6 : vector<16x128xf32> to vector<2x8x128xf32>
    %cst = arith.constant dense<0.000000e+00> : vector<8x128xf32>
    %9 = vector.multi_reduction <add>, %8, %cst [0] : vector<2x8x128xf32> to vector<8x128xf32>
    %10 = arith.addf %7, %9 : vector<8x128xf32>
    %c0_6 = arith.constant 0 : index
    %c0_7 = arith.constant 0 : index
    %11 = vector.load %arg4[%c0_6, %c0_7] : memref<8x128xf32, #tpu.memory_space<vmem>>, vector<8x128xf32>
    tpu.vector_store %arg4[%c0_6, %c0_7], %10 {strides = array<i32>} : memref<8x128xf32, #tpu.memory_space<vmem>>, vector<8x128xf32>,
    return
  }
  func.func @transform_0(%arg0: i32, %arg1: i32) -> (i32, i32) {
    %c1_i32 = arith.constant 1 : i32
    %0 = arith.muli %arg0, %c1_i32 : i32
    %1 = arith.addi %0, %arg1 : i32
    %c0_i32 = arith.constant 0 : i32
    %c0_i32_0 = arith.constant 0 : i32
    return %1, %c0_i32 : i32, i32
  }
  func.func @transform_1(%arg0: i32, %arg1: i32) -> (i32, i32) {
    %c1_i32 = arith.constant 1 : i32
    %0 = arith.muli %arg0, %c1_i32 : i32
    %1 = arith.addi %0, %arg1 : i32
    %c0_i32 = arith.constant 0 : i32
    %c0_i32_0 = arith.constant 0 : i32
    return %1, %c0_i32 : i32, i32
  }
  func.func @transform_2(%arg0: i32, %arg1: i32) -> (i32, i32) {
    %c0_i32 = arith.constant 0 : i32
    %c0_i32_0 = arith.constant 0 : i32
    return %arg0, %c0_i32 : i32, i32
  }
}

</mosaic_0001>

<bundles_post_ra>
// kernel: tpu_custom_call.1
= control target key start
LH: loop header
LB: loop body
LE: loop exit
PB: predicated region body
PF: predicated region fallthrough
CT: control target
= control target key end

     0   :  { %7 = vsyncpa [#allocation3], 0  ;;  %s219_s0 = inlined_call_operand.hbm [shape: f32[16,128], index: 0, kind: input, shape index: {}]   ;;  %s220_s1 = inlined_call_operand.hbm [shape: f32[16,128], index: 1, kind: input, shape index: {}]   ;;  %s221_s2 = inlined_call_operand.hbm [shape: f32[8,128], index: 2, kind: output, shape index: {}]  }
   0x1   :  { %8 = vsyncpa [#allocation6], 0 }
   0x2   :  { %9 = vsyncpa [#allocation4], 0  ;;  %s163_s9 = smov [#allocation2]   ;;  %s91_s13 = scalar_lea.hbm %s219_s0, 256 }
   0x3   :  { %s19_s10 = sshll.u32 %s163_s9, 4  ;;  %p92_p0 = scmp.ne.s32.totalorder %s219_s0, %s91_s13  ;;  %s20_s10 = int_to_ptr.vmem [resolvable:$true] %s19_s10 }
   0x4   :  { %p95_p1 = scmp.lt.u32.totalorder %s91_s13, %s219_s0 }
   0x6   :  { %p97_p2 = pnand %p95_p1, %p92_p0 }
   0x8   :  { %100 = shalt.err (!%p97_p2)
}
   0x9   :  { %s101_s18 = scalar_lea.vmem %s20_s10, 256  ;;  %p106_p4 = scmp.lt.s32.totalorder %s20_s10, %s20_s10 }
   0xa   :  { %p102_p3 = scmp.ne.s32.totalorder %s20_s10, %s101_s18  ;;  %p107_p5 = scmp.lt.s32.totalorder %s101_s18, %s101_s18 }
   0xc   :  { %p108_p6 = por %p107_p5, %p106_p4 }
   0xe   :  { %p109_p7 = pnand %p108_p6, %p102_p3 }
  0x10   :  { %112 = shalt.err (!%p109_p7)
}
  0x11   :  { %s164_s19 = smov 128   ;;  %s165_s20 = smov 8  }
  0x12   :  { %25 = dma.hbm_to_vmem [thread:$0]  %s219_s0, 256, %s20_s10, [#allocation3], %s164_s19, %s164_s19, %s165_s20  }
  0x13   :  { %s166_s23 = smov [#allocation5]   ;;  %s113_s27 = scalar_lea.hbm %s220_s1, 256 }
  0x14   :  { %s35_s24 = sshll.u32 %s166_s23, 4  ;;  %p114_p8 = scmp.ne.s32.totalorder %s220_s1, %s113_s27  ;;  %s36_s24 = int_to_ptr.vmem [resolvable:$true] %s35_s24 }
  0x15   :  { %p117_p9 = scmp.lt.u32.totalorder %s113_s27, %s220_s1 }
  0x17   :  { %p119_p10 = pnand %p117_p9, %p114_p8 }
  0x19   :  { %122 = shalt.err (!%p119_p10)
}
  0x1a   :  { %s123_s4 = scalar_lea.vmem %s36_s24, 256  ;;  %p128_p12 = scmp.lt.s32.totalorder %s36_s24, %s36_s24 }
  0x1b   :  { %p124_p11 = scmp.ne.s32.totalorder %s36_s24, %s123_s4  ;;  %p129_p13 = scmp.lt.s32.totalorder %s123_s4, %s123_s4 }
  0x1d   :  { %p130_p0 = por %p129_p13, %p128_p12 }
  0x1f   :  { %p131_p1 = pnand %p130_p0, %p124_p11 }
  0x21   :  { %134 = shalt.err (!%p131_p1)
}
  0x22   :  { %41 = dma.hbm_to_vmem [thread:$0]  %s220_s1, 256, %s36_s24, [#allocation6], %s164_s19, %s164_s19, %s165_s20  }
  0x23   :  { %157 = dma.done.wait [#allocation3], 256  }
  0x24   :  { %158 = vsyncadd [#allocation3], 4294967040 }
  0x25   :  { %159 = dma.done.wait [#allocation6], 256  }
  0x26   :  { %160 = vsyncadd [#allocation6], 4294967040  ;;  %v57_v0 = vld [vmem:[#allocation2] sm:$0xff]  ;;  %v58_v1 = vld [vmem:[#allocation2 + $0x8] sm:$0xff]  ;;  %s167_s6 = smov [#allocation7]  }
  0x27   :  { %v59_v2 = vld [vmem:[#allocation5] sm:$0xff]  ;;  %v60_v3 = vld [vmem:[#allocation5 + $0x8] sm:$0xff]  ;;  %s75_s7 = sshll.u32 %s167_s6, 4  ;;  %s76_s7 = int_to_ptr.vmem [resolvable:$true] %s75_s7 }
  0x28   :  { %v61_v4 = vsub.f32 %v57_v0, %v59_v2  ;;  %v62_v5 = vsub.f32 %v58_v1, %v60_v3  ;;  %s135_s8 = scalar_lea.vmem %s76_s7, 128  ;;  %p140_p3 = scmp.lt.s32.totalorder %s76_s7, %s76_s7 }
  0x29   :  { %p136_p2 = scmp.ne.s32.totalorder %s76_s7, %s135_s8  ;;  %p141_p4 = scmp.lt.s32.totalorder %s135_s8, %s135_s8 }
  0x2a   :  { %v63_v6 = vmul.f32 %v61_v4, %v61_v4  ;;  %v64_v7 = vmul.f32 %v62_v5, %v62_v5 }
  0x2b   :  { %p142_p5 = por %p141_p4, %p140_p3 }
  0x2c   :  { %v66_v8 = vadd.f32 %v64_v7, %v63_v6 }
  0x2d   :  { %p143_p6 = pnand %p142_p5, %p136_p2 }
  0x2e   :  { %68 = vst [vmem:[#allocation7] sm:$0xff] %v66_v8 }
  0x2f   :  { %146 = shalt.err (!%p143_p6)
}
  0x30   :  { %s147_s10 = scalar_lea.hbm %s221_s2, 128 }
  0x31   :  { %p148_p7 = scmp.ne.s32.totalorder %s221_s2, %s147_s10  ;;  %p151_p8 = scmp.lt.u32.totalorder %s147_s10, %s221_s2 }
  0x33   :  { %p153_p9 = pnand %p151_p8, %p148_p7 }
  0x35   :  { %156 = shalt.err (!%p153_p9)
}
  0x36   :  { %78 = dma.vmem_to_hbm [thread:$0]  %s76_s7, 128, %s221_s2, [#allocation4]  }
  0x37   :  { %161 = dma.done.wait [#allocation4], 128  }
  0x38   :  { %162 = vsyncadd [#allocation4], 4294967168 }
  0x39   :  { %82 = vsyncpa [#allocation3], 1 }
  0x3a   :  { %83 = vsyncpa [#allocation6], 1 }
  0x3b   :  { %84 = vsyncpa [#allocation4], 1 }

</bundles_post_ra>
